<compile_context>
chip_gen: v5e
topology: v5e:2x2
jax: 0.10.0
libtpu: 0.0.40
codegen_flags: <defaults>
</compile_context>

<pallas_src>
import functools

import jax
import jax.numpy as jnp
from jax.experimental import pallas as pl
from jax.experimental.pallas import tpu as pltpu


def _round_up(x, m):
    return ((x + m - 1) // m) * m


_FUSED_MAX_NODES = 1024                  # fused single-call path (padded N)
_RESIDENT_X_MAX_BYTES = 8 * 1024 * 1024  # keep X VMEM-resident below this
_VMEM_LIMIT = 48 * 1024 * 1024           # > scoped defaults, < 64 MiB (v7x)


# ---------------------------------------------------------------------------
# Fused small-graph kernel: entire encoder in one pallas_call, all operands
# VMEM-resident.  A / X / W stream as bf16 (MXU-native, half the bytes);
# all accumulation and the mean-pool matmul stay f32.
# ---------------------------------------------------------------------------
def _fused_encoder_kernel(a_ref, x_ref, w1_ref, b1_ref, w2_ref, b2_ref,
                          w3_ref, b3_ref, p_ref, out_ref):
    a = a_ref[...]

    def layer(h_bf16, w_ref, b_ref, relu):
        agg = jnp.dot(a, h_bf16, preferred_element_type=jnp.float32)
        h = jnp.dot(agg.astype(jnp.bfloat16), w_ref[...],
                    preferred_element_type=jnp.float32)
        h = h + b_ref[0:1, :]
        if relu:
            h = jnp.maximum(h, 0.0)
        return h

    h = layer(x_ref[...], w1_ref, b1_ref, True)
    h = layer(h.astype(jnp.bfloat16), w2_ref, b2_ref, True)
    h = layer(h.astype(jnp.bfloat16), w3_ref, b3_ref, False)
    # dropout: identity (eval mode; no RNG mask applied)
    # global_mean_pool (f32: pooling weights are 1/|graph|)
    out_ref[...] = jnp.dot(p_ref[...], h, preferred_element_type=jnp.float32)


def _fused_encoder(a_p, x_p, wbs, p_p):
    w1p, b1p, w2p, b2p, w3p, b3p = wbs
    n_pad = a_p.shape[0]
    fi = x_p.shape[1]
    f1, f2, f3 = w1p.shape[1], w2p.shape[1], w3p.shape[1]
    g_pad = p_p.shape[0]

    def full(shape):
        return pl.BlockSpec(shape, lambda i: (0, 0))

    flops = (2 * n_pad * n_pad * (fi + f1 + f2)
             + 2 * n_pad * (fi * f1 + f1 * f2 + f2 * f3)
             + 2 * g_pad * n_pad * f3)
    bytes_accessed = (a_p.size * a_p.dtype.itemsize
                      + x_p.size * x_p.dtype.itemsize
                      + sum(w.size * w.dtype.itemsize for w in wbs)
                      + p_p.size * p_p.dtype.itemsize
                      + g_pad * f3 * 4)

    return pl.pallas_call(
        _fused_encoder_kernel,
        out_shape=jax.ShapeDtypeStruct((g_pad, f3), jnp.float32),
        grid_spec=pltpu.PrefetchScalarGridSpec(
            num_scalar_prefetch=0,
            grid=(1,),
            in_specs=[
                full((n_pad, n_pad)),
                full((n_pad, fi)),
                full((fi, f1)), full((8, f1)),
                full((f1, f2)), full((8, f2)),
                full((f2, f3)), full((8, f3)),
                full((g_pad, n_pad)),
            ],
            out_specs=full((g_pad, f3)),
        ),
        compiler_params=pltpu.CompilerParams(
            dimension_semantics=("arbitrary",),
            vmem_limit_bytes=_VMEM_LIMIT,
        ),
        cost_estimate=pl.CostEstimate(flops=flops, transcendentals=0,
                                      bytes_accessed=bytes_accessed),
    )(a_p, x_p, w1p, b1p, w2p, b2p, w3p, b3p, p_p)


# ---------------------------------------------------------------------------
# Tiled per-layer kernel:  H = maybe_relu((A @ X) @ W + b)
#   Grid = (M // row_tile, K // k_tile); K is the reduction axis (last,
#   "arbitrary"); the A@X accumulator lives in f32 VMEM scratch (P3).
#   X is either streamed per-K-tile or held VMEM-resident for the whole call
#   and sliced in-kernel (x_resident=True) — the latter removes its repeated
#   HBM reads across row tiles.
# ---------------------------------------------------------------------------
def _gcn_layer_kernel(a_ref, x_ref, w_ref, b_ref, out_ref, acc_ref, *,
                      apply_relu, k_tile, x_resident):
    k = pl.program_id(1)

    @pl.when(k == 0)
    def _():
        acc_ref[...] = jnp.zeros_like(acc_ref)

    if x_resident:
        start = pl.multiple_of(k * k_tile, k_tile)
        x_blk = x_ref[pl.ds(start, k_tile), :]
    else:
        x_blk = x_ref[...]

    acc_ref[...] += jnp.dot(a_ref[...], x_blk,
                            preferred_element_type=jnp.float32)

    @pl.when(k == pl.num_programs(1) - 1)
    def _():
        # bf16 x bf16 epilogue matmul (full-rate MXU), f32 accumulation.
        h = jnp.dot(acc_ref[...].astype(jnp.bfloat16), w_ref[...],
                    preferred_element_type=jnp.float32)
        h = h + b_ref[0:1, :]
        if apply_relu:
            h = jnp.maximum(h, 0.0)
        out_ref[...] = h.astype(out_ref.dtype)


def _tiled_gcn_layer(a, x, w, b, *, apply_relu, out_dtype, row_tile, k_tile):
    m, k_dim = a.shape
    fin = x.shape[1]
    fout = w.shape[1]
    grid = (m // row_tile, k_dim // k_tile)

    # Keep X VMEM-resident across row tiles when it fits the budget
    # (factor 2 = pipeline buffering headroom).
    x_resident = (2 * k_dim * fin * x.dtype.itemsize) <= _RESIDENT_X_MAX_BYTES
    if x_resident:
        x_spec = pl.BlockSpec((k_dim, fin), lambda i, k: (0, 0))
        x_reads = 1
    else:
        x_spec = pl.BlockSpec((k_tile, fin), lambda i, k: (k, 0))
        x_reads = grid[0]

    flops = 2 * m * k_dim * fin + 2 * m * fin * fout
    bytes_accessed = (a.size * a.dtype.itemsize
                      + x.size * x.dtype.itemsize * x_reads
                      + w.size * w.dtype.itemsize
                      + b.size * b.dtype.itemsize
                      + m * fout * jnp.dtype(out_dtype).itemsize)

    return pl.pallas_call(
        functools.partial(_gcn_layer_kernel, apply_relu=apply_relu,
                          k_tile=k_tile, x_resident=x_resident),
        out_shape=jax.ShapeDtypeStruct((m, fout), out_dtype),
        grid_spec=pltpu.PrefetchScalarGridSpec(
            num_scalar_prefetch=0,
            grid=grid,
            in_specs=[
                pl.BlockSpec((row_tile, k_tile), lambda i, k: (i, k)),
                x_spec,
                pl.BlockSpec((fin, fout), lambda i, k: (0, 0)),
                pl.BlockSpec((8, fout), lambda i, k: (0, 0)),
            ],
            out_specs=pl.BlockSpec((row_tile, fout), lambda i, k: (i, 0)),
            scratch_shapes=[pltpu.VMEM((row_tile, fin), jnp.float32)],
        ),
        compiler_params=pltpu.CompilerParams(
            # Row tiles independent -> sharded across v7x's 2 TensorCores;
            # K is the reduction axis: arbitrary, and last in the grid.
            dimension_semantics=("parallel", "arbitrary"),
            vmem_limit_bytes=_VMEM_LIMIT,
        ),
        cost_estimate=pl.CostEstimate(flops=flops, transcendentals=0,
                                      bytes_accessed=bytes_accessed),
    )(a, x, w, b)


# ---------------------------------------------------------------------------
# Encoder forward: 3 GCN layers + global_mean_pool.
# ---------------------------------------------------------------------------
def gcn_encoder(a_hat, pool_mat, x, params):
    """a_hat: [N,N] f32 normalized adjacency; pool_mat: [G,N] f32; x: [N,F]."""
    w1, b1, w2, b2, w3, b3 = params
    n = x.shape[0]
    g = pool_mat.shape[0]
    f_in = w1.shape[0]
    f_out = w3.shape[1]

    # Feature dims padded to 128 lanes (lane-dense stores, full MXU columns),
    # graphs to 8 sublanes.
    fi = _round_up(f_in, 128)
    f1 = _round_up(w1.shape[1], 128)
    f2 = _round_up(w2.shape[1], 128)
    f3 = _round_up(f_out, 128)
    g_pad = _round_up(max(g, 8), 8)

    def pad_w(wm, r, c):   # weights stream as bf16 (MXU full rate)
        return jnp.zeros((r, c), jnp.bfloat16).at[
            :wm.shape[0], :wm.shape[1]].set(wm.astype(jnp.bfloat16))

    def pad_b(bv, c):      # bias stays f32, lives in row 0 of an (8, c) slab
        return jnp.zeros((8, c), jnp.float32).at[0, :bv.shape[-1]].set(
            bv.reshape(-1))

    w1p, b1p = pad_w(w1, fi, f1), pad_b(b1, f1)
    w2p, b2p = pad_w(w2, f1, f2), pad_b(b2, f2)
    w3p, b3p = pad_w(w3, f2, f3), pad_b(b3, f3)

    n_pad_small = _round_up(max(n, 128), 128)

    if n_pad_small <= _FUSED_MAX_NODES:
        # ---- fused small-graph path: one pallas_call, all VMEM-resident ----
        n_pad = n_pad_small
        a_p = jnp.zeros((n_pad, n_pad), jnp.bfloat16).at[:n, :n].set(
            a_hat.astype(jnp.bfloat16))
        x_p = jnp.zeros((n_pad, fi), jnp.bfloat16).at[:n, :f_in].set(
            x.astype(jnp.bfloat16))
        p_p = jnp.zeros((g_pad, n_pad), jnp.float32).at[:g, :n].set(pool_mat)
        pooled = _fused_encoder(a_p, x_p, (w1p, b1p, w2p, b2p, w3p, b3p), p_p)
        return pooled[:g, :f_out]

    # ---- tiled large-graph path ----
    # Nodes padded to a multiple of 512: tiles never degrade to 128, and
    # grid[0] >= 2 (n_pad > 1024 here), so both v7x TensorCores are used.
    n_pad = _round_up(n, 512)
    row_tile = 512
    k_tile = next(t for t in (2048, 1536, 1024, 512) if n_pad % t == 0)

    a_p = jnp.zeros((n_pad, n_pad), jnp.bfloat16).at[:n, :n].set(
        a_hat.astype(jnp.bfloat16))
    x_p = jnp.zeros((n_pad, fi), jnp.bfloat16).at[:n, :f_in].set(
        x.astype(jnp.bfloat16))

    # conv1 / conv2 / conv3 :  H = maybe_relu((A_hat @ X) @ W + b)
    # (padded node rows of H equal relu(b); harmless — the corresponding
    #  A_hat / pool columns are zero and they are sliced off below)
    h = _tiled_gcn_layer(a_p, x_p, w1p, b1p, apply_relu=True,
                         out_dtype=jnp.bfloat16, row_tile=row_tile,
                         k_tile=k_tile)
    h = _tiled_gcn_layer(a_p, h, w2p, b2p, apply_relu=True,
                         out_dtype=jnp.bfloat16, row_tile=row_tile,
                         k_tile=k_tile)
    h = _tiled_gcn_layer(a_p, h, w3p, b3p, apply_relu=False,
                         out_dtype=jnp.float32, row_tile=row_tile,
                         k_tile=k_tile)

    # dropout: identity (eval mode).
    # global_mean_pool: trivial G x N x F matmul -> plain XLA (no extra
    # pallas_call, no identity-matmul pass).
    return pool_mat @ h[:n, :f_out]


# ---------------- plain-JAX glue (graph construction) ----------------

def build_norm_adj(edge_index, num_nodes):
    """Dense GCN-normalized adjacency: D^{-1/2} (A + I) D^{-1/2}."""
    src, dst = edge_index[0], edge_index[1]
    loop = jnp.arange(num_nodes, dtype=edge_index.dtype)
    src = jnp.concatenate([src, loop])
    dst = jnp.concatenate([dst, loop])
    adj = jnp.zeros((num_nodes, num_nodes), jnp.float32).at[dst, src].add(1.0)
    deg = adj.sum(axis=1)
    dinv = jnp.where(deg > 0, 1.0 / jnp.sqrt(deg), 0.0)
    return dinv[:, None] * adj * dinv[None, :]


def build_pool_matrix(batch, num_graphs, num_nodes):
    """P[g, i] = 1/|graph g| if batch[i] == g else 0 (global_mean_pool)."""
    onehot = (batch[None, :] == jnp.arange(num_graphs)[:, None]).astype(jnp.float32)
    counts = onehot.sum(axis=1, keepdims=True)
    return onehot / jnp.maximum(counts, 1.0)


def glorot(key, fan_in, fan_out):
    limit = jnp.sqrt(6.0 / (fan_in + fan_out))
    return jax.random.uniform(key, (fan_in, fan_out), jnp.float32, -limit, limit)


def reference_forward(a_hat, pool_mat, x, params):
    """Pure-f32 reference of the module's forward."""
    w1, b1, w2, b2, w3, b3 = params
    h = jnp.maximum(a_hat @ (x @ w1) + b1, 0.0)
    h = jnp.maximum(a_hat @ (h @ w2) + b2, 0.0)
    h = a_hat @ (h @ w3) + b3
    return pool_mat @ h


def reference_forward_quantized(a_hat, pool_mat, x, params):
    """Reference mimicking the kernel's bf16 operand casts / f32 accumulate."""
    w1, b1, w2, b2, w3, b3 = params
    bf = lambda v: v.astype(jnp.bfloat16)
    a_q = bf(a_hat)

    def layer(h, w, b, relu):
        agg = jnp.dot(a_q, bf(h), preferred_element_type=jnp.float32)
        out = jnp.dot(bf(agg), bf(w), preferred_element_type=jnp.float32) + b
        return jnp.maximum(out, 0.0) if relu else out

    h = layer(x, w1, b1, True)
    h = layer(h, w2, b2, True)
    h = layer(h, w3, b3, False)
    return pool_mat @ h


if __name__ == "__main__":
    key = jax.random.PRNGKey(0)

    # ------------------------------------------------------------------
    # Case 1: small graph (module-scale shapes) -> fused single-call path.
    # ------------------------------------------------------------------
    num_nodes = 16
    num_graphs = 2
    num_edges = 40
    input_dim = 4
    hid_dim = 8
    gnn_embed_dim = 16

    k_x, k_e, k1, k2, k3, k_x2, k_e2 = jax.random.split(key, 7)

    x = jax.random.normal(k_x, (num_nodes, input_dim), jnp.float32)
    edge_index = jax.random.randint(k_e, (2, num_edges), 0, num_nodes, jnp.int32)
    batch = jnp.concatenate([
        jnp.zeros(num_nodes // 2, jnp.int32),
        jnp.ones(num_nodes - num_nodes // 2, jnp.int32),
    ])

    # GCNConv-style init: glorot weights, zero bias.
    w1 = glorot(k1, input_dim, hid_dim)
    b1 = jnp.zeros((1, hid_dim), jnp.float32)
    w2 = glorot(k2, hid_dim, hid_dim * 2)
    b2 = jnp.zeros((1, hid_dim * 2), jnp.float32)
    w3 = glorot(k3, hid_dim * 2, gnn_embed_dim)
    b3 = jnp.zeros((1, gnn_embed_dim), jnp.float32)
    params = (w1, b1, w2, b2, w3, b3)

    a_hat = build_norm_adj(edge_index, num_nodes)
    pool_mat = build_pool_matrix(batch, num_graphs, num_nodes)

    out = jax.block_until_ready(gcn_encoder(a_hat, pool_mat, x, params))
    ref_q = reference_forward_quantized(a_hat, pool_mat, x, params)
    ref_f = reference_forward(a_hat, pool_mat, x, params)
    assert out.shape == (num_graphs, gnn_embed_dim)
    assert jnp.allclose(out, ref_q, atol=2e-2, rtol=2e-2)
    assert jnp.allclose(out, ref_f, atol=6e-2, rtol=6e-2)

    # ------------------------------------------------------------------
    # Case 2: medium graph -> tiled path (512 row tiles, resident X,
    # bf16 epilogue, XLA pooling).  Exercises the large-graph code path.
    # ------------------------------------------------------------------
    num_nodes2 = 1200            # pads to 1536 -> 3 row tiles (>= 2 for v7x)
    num_graphs2 = 3
    num_edges2 = 4800
    x2 = jax.random.normal(k_x2, (num_nodes2, input_dim), jnp.float32)
    edge_index2 = jax.random.randint(k_e2, (2, num_edges2), 0, num_nodes2,
                                     jnp.int32)
    batch2 = jnp.repeat(jnp.arange(num_graphs2, dtype=jnp.int32),
                        num_nodes2 // num_graphs2)
    a_hat2 = build_norm_adj(edge_index2, num_nodes2)
    pool_mat2 = build_pool_matrix(batch2, num_graphs2, num_nodes2)

    out2 = jax.block_until_ready(gcn_encoder(a_hat2, pool_mat2, x2, params))
    ref_q2 = reference_forward_quantized(a_hat2, pool_mat2, x2, params)
    ref_f2 = reference_forward(a_hat2, pool_mat2, x2, params)
    assert out2.shape == (num_graphs2, gnn_embed_dim)
    assert jnp.allclose(out2, ref_q2, atol=2e-2, rtol=2e-2)
    assert jnp.allclose(out2, ref_f2, atol=6e-2, rtol=6e-2)

    print("KERNEL_OK")
</pallas_src>

<mosaic_0001>
module attributes {stable_mosaic.version = 11 : i64} {
  func.func @_fused_encoder_kernel(%arg0: i32, %arg1: memref<128x128xbf16, #tpu.memory_space<vmem>>, %arg2: memref<128x128xbf16, #tpu.memory_space<vmem>>, %arg3: memref<128x128xbf16, #tpu.memory_space<vmem>>, %arg4: memref<8x128xf32, #tpu.memory_space<vmem>>, %arg5: memref<128x128xbf16, #tpu.memory_space<vmem>>, %arg6: memref<8x128xf32, #tpu.memory_space<vmem>>, %arg7: memref<128x128xbf16, #tpu.memory_space<vmem>>, %arg8: memref<8x128xf32, #tpu.memory_space<vmem>>, %arg9: memref<8x128xf32, #tpu.memory_space<vmem>>, %arg10: memref<8x128xf32, #tpu.memory_space<vmem>>) attributes {dimension_semantics = [#tpu.dimension_semantics<arbitrary>], iteration_bounds = array<i64: 1>, scalar_prefetch = 0 : i64, scratch_operands = 0 : i64, tpu.core_type = #tpu.core_type<tc>, window_params = [{pipeline_mode = #tpu.pipeline_mode<synchronous>, transform_indices = @transform_0, window_bounds = array<i64: 128, 128>}, {pipeline_mode = #tpu.pipeline_mode<synchronous>, transform_indices = @transform_1, window_bounds = array<i64: 128, 128>}, {pipeline_mode = #tpu.pipeline_mode<synchronous>, transform_indices = @transform_2, window_bounds = array<i64: 128, 128>}, {pipeline_mode = #tpu.pipeline_mode<synchronous>, transform_indices = @transform_3, window_bounds = array<i64: 8, 128>}, {pipeline_mode = #tpu.pipeline_mode<synchronous>, transform_indices = @transform_4, window_bounds = array<i64: 128, 128>}, {pipeline_mode = #tpu.pipeline_mode<synchronous>, transform_indices = @transform_5, window_bounds = array<i64: 8, 128>}, {pipeline_mode = #tpu.pipeline_mode<synchronous>, transform_indices = @transform_6, window_bounds = array<i64: 128, 128>}, {pipeline_mode = #tpu.pipeline_mode<synchronous>, transform_indices = @transform_7, window_bounds = array<i64: 8, 128>}, {pipeline_mode = #tpu.pipeline_mode<synchronous>, transform_indices = @transform_8, window_bounds = array<i64: 8, 128>}, {pipeline_mode = #tpu.pipeline_mode<synchronous>, transform_indices = @transform_9, window_bounds = array<i64: 8, 128>}]} {
    %c0 = arith.constant 0 : index
    %c0_0 = arith.constant 0 : index
    %0 = vector.load %arg1[%c0, %c0_0] : memref<128x128xbf16, #tpu.memory_space<vmem>>, vector<128x128xbf16>
    %c0_1 = arith.constant 0 : index
    %c0_2 = arith.constant 0 : index
    %1 = vector.load %arg2[%c0_1, %c0_2] : memref<128x128xbf16, #tpu.memory_space<vmem>>, vector<128x128xbf16>
    %cst = arith.constant dense<0.000000e+00> : vector<128x128xf32>
    %2 = tpu.matmul %0, %1, %cst {dimension_numbers = #tpu.dot_dimension_numbers<[1], [0], [0], [1], [0, 0, 1, 1], [], []>} : vector<128x128xbf16>, vector<128x128xbf16>, vector<128x128xf32> -> vector<128x128xf32>
    %3 = arith.truncf %2 : vector<128x128xf32> to vector<128x128xbf16>
    %c0_3 = arith.constant 0 : index
    %c0_4 = arith.constant 0 : index
    %4 = vector.load %arg3[%c0_3, %c0_4] : memref<128x128xbf16, #tpu.memory_space<vmem>>, vector<128x128xbf16>
    %cst_5 = arith.constant dense<0.000000e+00> : vector<128x128xf32>
    %5 = tpu.matmul %3, %4, %cst_5 {dimension_numbers = #tpu.dot_dimension_numbers<[1], [0], [0], [1], [0, 0, 1, 1], [], []>} : vector<128x128xbf16>, vector<128x128xbf16>, vector<128x128xf32> -> vector<128x128xf32>
    %c0_6 = arith.constant 0 : index
    %c0_7 = arith.constant 0 : index
    %6 = vector.load %arg4[%c0_6, %c0_7] : memref<8x128xf32, #tpu.memory_space<vmem>>, vector<1x128xf32>
    %7 = vector.broadcast %6 : vector<1x128xf32> to vector<128x128xf32>
    %8 = arith.addf %5, %7 : vector<128x128xf32>
    %cst_8 = arith.constant 0.000000e+00 : f32
    %9 = vector.broadcast %cst_8 : f32 to vector<128x128xf32>
    %10 = arith.maximumf %8, %9 : vector<128x128xf32>
    %11 = arith.truncf %10 : vector<128x128xf32> to vector<128x128xbf16>
    %cst_9 = arith.constant dense<0.000000e+00> : vector<128x128xf32>
    %12 = tpu.matmul %0, %11, %cst_9 {dimension_numbers = #tpu.dot_dimension_numbers<[1], [0], [0], [1], [0, 0, 1, 1], [], []>} : vector<128x128xbf16>, vector<128x128xbf16>, vector<128x128xf32> -> vector<128x128xf32>
    %13 = arith.truncf %12 : vector<128x128xf32> to vector<128x128xbf16>
    %c0_10 = arith.constant 0 : index
    %c0_11 = arith.constant 0 : index
    %14 = vector.load %arg5[%c0_10, %c0_11] : memref<128x128xbf16, #tpu.memory_space<vmem>>, vector<128x128xbf16>
    %cst_12 = arith.constant dense<0.000000e+00> : vector<128x128xf32>
    %15 = tpu.matmul %13, %14, %cst_12 {dimension_numbers = #tpu.dot_dimension_numbers<[1], [0], [0], [1], [0, 0, 1, 1], [], []>} : vector<128x128xbf16>, vector<128x128xbf16>, vector<128x128xf32> -> vector<128x128xf32>
    %c0_13 = arith.constant 0 : index
    %c0_14 = arith.constant 0 : index
    %16 = vector.load %arg6[%c0_13, %c0_14] : memref<8x128xf32, #tpu.memory_space<vmem>>, vector<1x128xf32>
    %17 = vector.broadcast %16 : vector<1x128xf32> to vector<128x128xf32>
    %18 = arith.addf %15, %17 : vector<128x128xf32>
    %cst_15 = arith.constant 0.000000e+00 : f32
    %19 = vector.broadcast %cst_15 : f32 to vector<128x128xf32>
    %20 = arith.maximumf %18, %19 : vector<128x128xf32>
    %21 = arith.truncf %20 : vector<128x128xf32> to vector<128x128xbf16>
    %cst_16 = arith.constant dense<0.000000e+00> : vector<128x128xf32>
    %22 = tpu.matmul %0, %21, %cst_16 {dimension_numbers = #tpu.dot_dimension_numbers<[1], [0], [0], [1], [0, 0, 1, 1], [], []>} : vector<128x128xbf16>, vector<128x128xbf16>, vector<128x128xf32> -> vector<128x128xf32>
    %23 = arith.truncf %22 : vector<128x128xf32> to vector<128x128xbf16>
    %c0_17 = arith.constant 0 : index
    %c0_18 = arith.constant 0 : index
    %24 = vector.load %arg7[%c0_17, %c0_18] : memref<128x128xbf16, #tpu.memory_space<vmem>>, vector<128x128xbf16>
    %cst_19 = arith.constant dense<0.000000e+00> : vector<128x128xf32>
    %25 = tpu.matmul %23, %24, %cst_19 {dimension_numbers = #tpu.dot_dimension_numbers<[1], [0], [0], [1], [0, 0, 1, 1], [], []>} : vector<128x128xbf16>, vector<128x128xbf16>, vector<128x128xf32> -> vector<128x128xf32>
    %c0_20 = arith.constant 0 : index
    %c0_21 = arith.constant 0 : index
    %26 = vector.load %arg8[%c0_20, %c0_21] : memref<8x128xf32, #tpu.memory_space<vmem>>, vector<1x128xf32>
    %27 = vector.broadcast %26 : vector<1x128xf32> to vector<128x128xf32>
    %28 = arith.addf %25, %27 : vector<128x128xf32>
    %c0_22 = arith.constant 0 : index
    %c0_23 = arith.constant 0 : index
    %29 = vector.load %arg9[%c0_22, %c0_23] : memref<8x128xf32, #tpu.memory_space<vmem>>, vector<8x128xf32>
    %cst_24 = arith.constant dense<0.000000e+00> : vector<8x128xf32>
    %30 = tpu.matmul %29, %28, %cst_24 {dimension_numbers = #tpu.dot_dimension_numbers<[1], [0], [0], [1], [0, 0, 1, 1], [], []>} : vector<8x128xf32>, vector<128x128xf32>, vector<8x128xf32> -> vector<8x128xf32>
    %c0_25 = arith.constant 0 : index
    %c0_26 = arith.constant 0 : index
    %31 = vector.load %arg10[%c0_25, %c0_26] : memref<8x128xf32, #tpu.memory_space<vmem>>, vector<8x128xf32>
    tpu.vector_store %arg10[%c0_25, %c0_26], %30 {strides = array<i32>} : memref<8x128xf32, #tpu.memory_space<vmem>>, vector<8x128xf32>,
    return
  }
  func.func @transform_0(%arg0: i32) -> (i32, i32) {
    %c0_i32 = arith.constant 0 : i32
    %c0_i32_0 = arith.constant 0 : i32
    %c0_i32_1 = arith.constant 0 : i32
    return %c0_i32, %c0_i32_0 : i32, i32
  }
  func.func @transform_1(%arg0: i32) -> (i32, i32) {
    %c0_i32 = arith.constant 0 : i32
    %c0_i32_0 = arith.constant 0 : i32
    %c0_i32_1 = arith.constant 0 : i32
    return %c0_i32, %c0_i32_0 : i32, i32
  }
  func.func @transform_2(%arg0: i32) -> (i32, i32) {
    %c0_i32 = arith.constant 0 : i32
    %c0_i32_0 = arith.constant 0 : i32
    %c0_i32_1 = arith.constant 0 : i32
    return %c0_i32, %c0_i32_0 : i32, i32
  }
  func.func @transform_3(%arg0: i32) -> (i32, i32) {
    %c0_i32 = arith.constant 0 : i32
    %c0_i32_0 = arith.constant 0 : i32
    %c0_i32_1 = arith.constant 0 : i32
    return %c0_i32, %c0_i32_0 : i32, i32
  }
  func.func @transform_4(%arg0: i32) -> (i32, i32) {
    %c0_i32 = arith.constant 0 : i32
    %c0_i32_0 = arith.constant 0 : i32
    %c0_i32_1 = arith.constant 0 : i32
    return %c0_i32, %c0_i32_0 : i32, i32
  }
  func.func @transform_5(%arg0: i32) -> (i32, i32) {
    %c0_i32 = arith.constant 0 : i32
    %c0_i32_0 = arith.constant 0 : i32
    %c0_i32_1 = arith.constant 0 : i32
    return %c0_i32, %c0_i32_0 : i32, i32
  }
  func.func @transform_6(%arg0: i32) -> (i32, i32) {
    %c0_i32 = arith.constant 0 : i32
    %c0_i32_0 = arith.constant 0 : i32
    %c0_i32_1 = arith.constant 0 : i32
    return %c0_i32, %c0_i32_0 : i32, i32
  }
  func.func @transform_7(%arg0: i32) -> (i32, i32) {
    %c0_i32 = arith.constant 0 : i32
    %c0_i32_0 = arith.constant 0 : i32
    %c0_i32_1 = arith.constant 0 : i32
    return %c0_i32, %c0_i32_0 : i32, i32
  }
  func.func @transform_8(%arg0: i32) -> (i32, i32) {
    %c0_i32 = arith.constant 0 : i32
    %c0_i32_0 = arith.constant 0 : i32
    %c0_i32_1 = arith.constant 0 : i32
    return %c0_i32, %c0_i32_0 : i32, i32
  }
  func.func @transform_9(%arg0: i32) -> (i32, i32) {
    %c0_i32 = arith.constant 0 : i32
    %c0_i32_0 = arith.constant 0 : i32
    %c0_i32_1 = arith.constant 0 : i32
    return %c0_i32, %c0_i32_0 : i32, i32
  }
}

</mosaic_0001>

<bundles_post_ra>
// kernel: tpu_custom_call.1
= control target key start
LH: loop header
LB: loop body
LE: loop exit
PB: predicated region body
PF: predicated region fallthrough
CT: control target
= control target key end

     0   :  { %14 = vsyncpa [#allocation3], 0  ;;  %s1530_s0 = inlined_call_operand.hbm [shape: bf16[128,128], index: 0, kind: input, shape index: {}]   ;;  %s1531_s1 = inlined_call_operand.hbm [shape: bf16[128,128], index: 1, kind: input, shape index: {}]   ;;  %s1532_s2 = inlined_call_operand.hbm [shape: bf16[128,128], index: 2, kind: input, shape index: {}]   ;;  %s1533_s3 = inlined_call_operand.hbm [shape: f32[8,128], index: 3, kind: input, shape index: {}]   ;;  %s1534_s4 = inlined_call_operand.hbm [shape: bf16[128,128], index: 4, kind: input, shape index: {}]   ;;  %s1535_s5 = inlined_call_operand.hbm [shape: f32[8,128], index: 5, kind: input, shape index: {}]   ;;  %s1536_s6 = inlined_call_operand.hbm [shape: bf16[128,128], index: 6, kind: input, shape index: {}]   ;;  %s1537_s7 = inlined_call_operand.hbm [shape: f32[8,128], index: 7, kind: input, shape index: {}]   ;;  %s1538_s8 = inlined_call_operand.hbm [shape: f32[8,128], index: 8, kind: input, shape index: {}]   ;;  %s1539_s9 = inlined_call_operand.hbm [shape: f32[8,128], index: 9, kind: output, shape index: {}]  }
   0x1   :  { %15 = vsyncpa [#allocation6], 0 }
   0x2   :  { %16 = vsyncpa [#allocation9], 0 }
   0x3   :  { %17 = vsyncpa [#allocation12], 0 }
   0x4   :  { %18 = vsyncpa [#allocation15], 0 }
   0x5   :  { %19 = vsyncpa [#allocation4], 0  ;;  %s37_s11 = sshll.u32 %s1531_s1, 4  ;;  %s1383_s12 = smov [#allocation5]   ;;  %s38_s11 = int_to_ptr.hbm [resolvable:$true] %s37_s11 }
   0x6   :  { %s39_s13 = sshll.u32 %s1383_s12, 4  ;;  %s64_s16 = sshll.u32 %s1533_s3, 4  ;;  %s40_s13 = int_to_ptr.vmem [resolvable:$true] %s39_s13  ;;  %s65_s16 = int_to_ptr.hbm [resolvable:$true] %s64_s16 }
   0x7   :  { %s1384_s17 = smov 64   ;;  %s1385_s18 = smov 4  }
   0x8   :  { %45 = dma.hbm_to_vmem [thread:$0]  %s38_s11, 1024, %s40_s13, [#allocation6], %s1384_s17, %s1384_s17, %s1385_s18  }
   0x9   :  { %s1386_s19 = smov [#allocation8]   ;;  %s88_s1 = sshll.u32 %s1535_s5, 4  ;;  %s89_s1 = int_to_ptr.hbm [resolvable:$true] %s88_s1 }
   0xa   :  { %s66_s20 = sshll.u32 %s1386_s19, 4  ;;  %s112_s3 = sshll.u32 %s1537_s7, 4  ;;  %s67_s20 = int_to_ptr.vmem [resolvable:$true] %s66_s20  ;;  %s113_s3 = int_to_ptr.hbm [resolvable:$true] %s112_s3 }
   0xb   :  { %69 = dma.hbm_to_vmem [thread:$0]  %s65_s16, 128, %s67_s20, [#allocation9]  }
   0xc   :  { %s1387_s25 = smov [#allocation11]   ;;  %s1388_s27 = smov [#allocation14]  }
   0xd   :  { %s90_s26 = sshll.u32 %s1387_s25, 4  ;;  %s114_s28 = sshll.u32 %s1388_s27, 4  ;;  %s91_s26 = int_to_ptr.vmem [resolvable:$true] %s90_s26  ;;  %s115_s28 = int_to_ptr.vmem [resolvable:$true] %s114_s28 }
   0xe   :  { %93 = dma.hbm_to_vmem [thread:$0]  %s89_s1, 128, %s91_s26, [#allocation12]  }
   0xf   :  { %s24_s10 = sshll.u32 %s1530_s0, 4  ;;  %s50_s12 = sshll.u32 %s1532_s2, 4  ;;  %s25_s10 = int_to_ptr.hbm [resolvable:$true] %s24_s10  ;;  %s51_s12 = int_to_ptr.hbm [resolvable:$true] %s50_s12 }
  0x10   :  { %117 = dma.hbm_to_vmem [thread:$0]  %s113_s3, 128, %s115_s28, [#allocation15]  }
  0x11   :  { %s1389_s13 = smov [#allocation2]   ;;  %s1390_s14 = smov [#allocation7]  }
  0x12   :  { %s26_s7 = sshll.u32 %s1389_s13, 4  ;;  %s52_s15 = sshll.u32 %s1390_s14, 4  ;;  %s27_s7 = int_to_ptr.vmem [resolvable:$true] %s26_s7  ;;  %s53_s15 = int_to_ptr.vmem [resolvable:$true] %s52_s15 }
  0x13   :  { %32 = dma.hbm_to_vmem [thread:$0]  %s25_s10, 1024, %s27_s7, [#allocation3], %s1384_s17, %s1384_s17, %s1385_s18  }
  0x14   :  { %s74_s0 = sshll.u32 %s1534_s4, 4  ;;  %s98_s21 = sshll.u32 %s1536_s6, 4  ;;  %s75_s0 = int_to_ptr.hbm [resolvable:$true] %s74_s0  ;;  %s99_s21 = int_to_ptr.hbm [resolvable:$true] %s98_s21 }
  0x15   :  { %58 = dma.hbm_to_vmem [thread:$0]  %s51_s12, 1024, %s53_s15, [#allocation6], %s1384_s17, %s1384_s17, %s1385_s18  }
  0x16   :  { %s1391_s22 = smov [#allocation10]   ;;  %s1392_s23 = smov [#allocation13]  }
  0x17   :  { %s76_s1 = sshll.u32 %s1391_s22, 4  ;;  %s100_s4 = sshll.u32 %s1392_s23, 4  ;;  %s77_s1 = int_to_ptr.vmem [resolvable:$true] %s76_s1  ;;  %s101_s4 = int_to_ptr.vmem [resolvable:$true] %s100_s4 }
  0x18   :  { %82 = dma.hbm_to_vmem [thread:$0]  %s75_s0, 1024, %s77_s1, [#allocation9], %s1384_s17, %s1384_s17, %s1385_s18  }
  0x19   :  { %s123_s25 = sshll.u32 %s1538_s8, 4  ;;  %s1393_s6 = smov [#allocation16]   ;;  %s124_s25 = int_to_ptr.hbm [resolvable:$true] %s123_s25 }
  0x1a   :  { %106 = dma.hbm_to_vmem [thread:$0]  %s99_s21, 1024, %s101_s4, [#allocation12], %s1384_s17, %s1384_s17, %s1385_s18  }
  0x1b   :  { %s125_s26 = sshll.u32 %s1393_s6, 4  ;;  %s126_s26 = int_to_ptr.vmem [resolvable:$true] %s125_s26 }
  0x1c   :  { %128 = dma.hbm_to_vmem [thread:$0]  %s124_s25, 128, %s126_s26, [#allocation15]  }
  0x1d   :  { %1371 = dma.done.wait [#allocation3], 1024  }
  0x1e   :  { %1372 = vsyncadd [#allocation3], 4294966272 }
  0x1f   :  { %1373 = dma.done.wait [#allocation6], 2048  }
  0x20   :  { %1374 = vsyncadd [#allocation6], 4294965248 }
  0x21   :  { %1375 = dma.done.wait [#allocation9], 1152  }
  0x22   :  { %1376 = vsyncadd [#allocation9], 4294966144 }
  0x23   :  { %1377 = dma.done.wait [#allocation12], 1152  }
  0x24   :  { %1378 = vsyncadd [#allocation12], 4294966144 }
  0x25   :  { %1379 = dma.done.wait [#allocation15], 256  }
  0x26   :  { %1380 = vsyncadd [#allocation15], 4294967040  ;;  %v1075_v0 = vld [vmem:[#allocation5 + $0x38] sm:$0xff]  ;;  %v1074_v1 = vld [vmem:[#allocation5 + $0x30] sm:$0xff]  ;;  %s1394_s8 = smov [#allocation17]   ;;  %s886_s28 = sshll.u32 %s1539_s9, 4  ;;  %s887_s28 = int_to_ptr.hbm [resolvable:$true] %s886_s28 }
  0x27   :  { %293 = vmatpush.bf16.msra.mxu0 %v1075_v0  ;;  %1100 = vmatpush.bf16.msra.mxu3 %v1075_v0  ;;  %v1073_v2 = vld [vmem:[#allocation5 + $0x28] sm:$0xff]  ;;  %v1072_v3 = vld [vmem:[#allocation5 + $0x20] sm:$0xff]  ;;  %v1071_v4 = vld [vmem:[#allocation5 + $0x18] sm:$0xff]  ;;  %s884_s17 = sshll.u32 %s1394_s8, 4  ;;  %s885_s17 = int_to_ptr.vmem [resolvable:$true] %s884_s17 }
  0x28   :  { %v1070_v5 = vld [vmem:[#allocation5 + $0x10] sm:$0xff]  ;;  %v1069_v6 = vld [vmem:[#allocation5 + $0x8] sm:$0xff]  ;;  %v1068_v7 = vld [vmem:[#allocation5] sm:$0xff] }
  0x29   :  { %v1487_v8 = vld [vmem:[#allocation2] sm:$0xff]  ;;  %v1489_v9 = vld [vmem:[#allocation2 + $0x28] sm:$0xff]  ;;  %v1495_v11 = vld [vmem:[#allocation2 + $0x30] sm:$0xff] }
  0x2a   :  { %v1493_v10 = vld [vmem:[#allocation2 + $0x8] sm:$0xff]  ;;  %v1499_v12 = vld [vmem:[#allocation2 + $0x10] sm:$0xff]  ;;  %v1501_v13 = vld [vmem:[#allocation2 + $0x38] sm:$0xff] }
  0x2b   :  { %294 = vmatpush.bf16.msra.mxu0 %v1074_v1  ;;  %1101 = vmatpush.bf16.msra.mxu3 %v1074_v1  ;;  %v1083_v14 = vld [vmem:[#allocation7 + $0x38] sm:$0xff]  ;;  %v1082_v15 = vld [vmem:[#allocation7 + $0x30] sm:$0xff]  ;;  %v1081_v16 = vld [vmem:[#allocation7 + $0x28] sm:$0xff] }
  0x2c   :  { %416 = vmatpush.bf16.msra.mxu1 %v1083_v14  ;;  %1108 = vmatpush.bf16.msra.mxu2 %v1083_v14  ;;  %v1080_v17 = vld [vmem:[#allocation7 + $0x20] sm:$0xff]  ;;  %v1505_v18 = vld [vmem:[#allocation2 + $0x18] sm:$0xff]  ;;  %v1078_v21 = vld [vmem:[#allocation7 + $0x10] sm:$0xff] }
  0x2d   :  { %v1079_v19 = vld [vmem:[#allocation7 + $0x18] sm:$0xff]  ;;  %v1508_v20 = vld [vmem:[#allocation2 + $0x20] sm:$0xff]  ;;  %v1077_v22 = vld [vmem:[#allocation7 + $0x8] sm:$0xff] }
  0x2e   :  { %v1076_v23 = vld [vmem:[#allocation7] sm:$0xff] }
  0x2f   :  { %295 = vmatpush.bf16.msra.mxu0 %v1073_v2  ;;  %1102 = vmatpush.bf16.msra.mxu3 %v1073_v2  ;;  %v1128_v60 = vld [vmem:[#allocation8] ss:$0 sm:$0xff] }
  0x30   :  { %417 = vmatpush.bf16.msra.mxu1 %v1082_v15  ;;  %1109 = vmatpush.bf16.msra.mxu2 %v1082_v15 }
  0x33   :  { %296 = vmatpush.bf16.msra.mxu0 %v1072_v3  ;;  %1103 = vmatpush.bf16.msra.mxu3 %v1072_v3 }
  0x34   :  { %418 = vmatpush.bf16.msra.mxu1 %v1081_v16  ;;  %1110 = vmatpush.bf16.msra.mxu2 %v1081_v16 }
  0x37   :  { %297 = vmatpush.bf16.msra.mxu0 %v1071_v4  ;;  %1104 = vmatpush.bf16.msra.mxu3 %v1071_v4 }
  0x38   :  { %419 = vmatpush.bf16.msra.mxu1 %v1080_v17  ;;  %1111 = vmatpush.bf16.msra.mxu2 %v1080_v17 }
  0x3b   :  { %298 = vmatpush.bf16.msra.mxu0 %v1070_v5  ;;  %1105 = vmatpush.bf16.msra.mxu3 %v1070_v5 }
  0x3c   :  { %420 = vmatpush.bf16.msra.mxu1 %v1079_v19  ;;  %1112 = vmatpush.bf16.msra.mxu2 %v1079_v19 }
  0x3f   :  { %299 = vmatpush.bf16.msra.mxu0 %v1069_v6  ;;  %1106 = vmatpush.bf16.msra.mxu3 %v1069_v6 }
  0x40   :  { %421 = vmatpush.bf16.msra.mxu1 %v1078_v21  ;;  %1113 = vmatpush.bf16.msra.mxu2 %v1078_v21 }
  0x43   :  { %300 = vmatpush.bf16.msra.mxu0 %v1068_v7  ;;  %1107 = vmatpush.bf16.msra.mxu3 %v1068_v7 }
  0x44   :  { %422 = vmatpush.bf16.msra.mxu1 %v1077_v22  ;;  %1114 = vmatpush.bf16.msra.mxu2 %v1077_v22 }
  0x46   :  { %301 = vmatmul.bf16.vlgmr.msra.gmra.mxu0 %v1487_v8  ;;  %326 = vmatmul.bf16.vlgmr.msra.gmra.mxu3 %v1489_v9 }
  0x48   :  { %423 = vmatpush.bf16.msra.mxu1 %v1076_v23  ;;  %1115 = vmatpush.bf16.msra.mxu2 %v1076_v23 }
  0x56   :  { %306 = vmatmul.bf16.gmra.mxu0 %v1493_v10  ;;  %331 = vmatmul.bf16.gmra.mxu3 %v1495_v11 }
  0x66   :  { %311 = vmatmul.bf16.gmra.mxu0 %v1499_v12  ;;  %336 = vmatmul.bf16.gmra.mxu3 %v1501_v13 }
  0x76   :  { %316 = vmatmul.bf16.gmra.mxu0 %v1505_v18 }
  0x86   :  { %321 = vmatmul.bf16.gmra.mxu0 %v1508_v20 }
  0xc3   :  { %v302_v24 = vpop.f32.mrf.mxu0 }
  0xc9   :  { %v327_v25 = vpop.f32.mrf.mxu3 }
  0xcb   :  { %v304_v26 = vpop.f32.mrf.mxu0 }
  0xcc   :  { %v342_v27 = vpack.c.bf16 %v304_v26, %v302_v24 }
  0xce   :  { %424 = vmatmul.bf16.vlgmr.msra.gmra.mxu1 %v342_v27 }
  0xd1   :  { %v329_v28 = vpop.f32.mrf.mxu3 }
  0xd2   :  { %v347_v29 = vpack.c.bf16 %v329_v28, %v327_v25 }
  0xd3   :  { %v307_v30 = vpop.f32.mrf.mxu0 }
  0xd4   :  { %449 = vmatmul.bf16.vlgmr.msra.gmra.mxu2 %v347_v29 }
  0xd9   :  { %v332_v31 = vpop.f32.mrf.mxu3 }
  0xdb   :  { %v309_v32 = vpop.f32.mrf.mxu0 }
  0xdc   :  { %v343_v33 = vpack.c.bf16 %v309_v32, %v307_v30 }
  0xde   :  { %429 = vmatmul.bf16.gmra.mxu1 %v343_v33 }
  0xe1   :  { %v334_v34 = vpop.f32.mrf.mxu3 }
  0xe2   :  { %v348_v35 = vpack.c.bf16 %v334_v34, %v332_v31 }
  0xe3   :  { %v312_v36 = vpop.f32.mrf.mxu0 }
  0xe4   :  { %454 = vmatmul.bf16.gmra.mxu2 %v348_v35 }
  0xe9   :  { %v337_v37 = vpop.f32.mrf.mxu3 }
  0xeb   :  { %v314_v38 = vpop.f32.mrf.mxu0 }
  0xec   :  { %v344_v39 = vpack.c.bf16 %v314_v38, %v312_v36 }
  0xee   :  { %434 = vmatmul.bf16.gmra.mxu1 %v344_v39 }
  0xf1   :  { %v339_v40 = vpop.f32.mrf.mxu3 }
  0xf2   :  { %v349_v41 = vpack.c.bf16 %v339_v40, %v337_v37 }
  0xf3   :  { %v317_v42 = vpop.f32.mrf.mxu0 }
  0xf4   :  { %459 = vmatmul.bf16.gmra.mxu2 %v349_v41 }
  0xfb   :  { %v319_v43 = vpop.f32.mrf.mxu0 }
  0xfc   :  { %v345_v44 = vpack.c.bf16 %v319_v43, %v317_v42 }
  0xfe   :  { %439 = vmatmul.bf16.gmra.mxu1 %v345_v44 }
 0x103   :  { %v322_v45 = vpop.f32.mrf.mxu0 }
 0x10b   :  { %v324_v46 = vpop.f32.mrf.mxu0 }
 0x10c   :  { %v346_v47 = vpack.c.bf16 %v324_v46, %v322_v45 }
 0x10e   :  { %444 = vmatmul.bf16.gmra.mxu1 %v346_v47 }
 0x14b   :  { %v425_v48 = vpop.f32.mrf.mxu1 }
 0x14c   :  { %v426_v43 = vadd.f32 %v1128_v60, %v425_v48  ;;  %v1090_v48 = vld [vmem:[#allocation10 + $0x30] sm:$0xff] }
 0x14e   :  { %v465_v47 = vmax.f32 %v426_v43, 0.0 }
 0x153   :  { %v427_v49 = vpop.f32.mrf.mxu1 }
 0x154   :  { %v428_v40 = vadd.f32 %v1128_v60, %v427_v49  ;;  %v1091_v49 = vld [vmem:[#allocation10 + $0x38] sm:$0xff] }
 0x155   :  { %612 = vmatpush.bf16.msrb.mxu3 %v1091_v49 }
 0x156   :  { %v466_v45 = vmax.f32 %v428_v40, 0.0 }
 0x157   :  { %v450_v50 = vpop.f32.mrf.mxu2 }
 0x158   :  { %v451_v14 = vadd.f32 %v1128_v60, %v450_v50  ;;  %v481_v50 = vpack.c.bf16 %v466_v45, %v465_v47 }
 0x159   :  { %613 = vmatpush.bf16.msrb.mxu3 %v1090_v48 }
 0x15a   :  { %v475_v19 = vmax.f32 %v451_v14, 0.0 }
 0x15b   :  { %v430_v51 = vpop.f32.mrf.mxu1 }
 0x15c   :  { %v431_v38 = vadd.f32 %v1128_v60, %v430_v51  ;;  %v1089_v51 = vld [vmem:[#allocation10 + $0x28] sm:$0xff] }
 0x15d   :  { %614 = vmatpush.bf16.msrb.mxu3 %v1089_v51 }
 0x15e   :  { %v467_v44 = vmax.f32 %v431_v38, 0.0 }
 0x15f   :  { %v452_v52 = vpop.f32.mrf.mxu2 }
 0x160   :  { %v453_v5 = vadd.f32 %v1128_v60, %v452_v52  ;;  %v1088_v52 = vld [vmem:[#allocation10 + $0x20] sm:$0xff] }
 0x161   :  { %615 = vmatpush.bf16.msrb.mxu3 %v1088_v52 }
 0x162   :  { %v476_v16 = vmax.f32 %v453_v5, 0.0 }
 0x163   :  { %v432_v53 = vpop.f32.mrf.mxu1 }
 0x164   :  { %v486_v22 = vpack.c.bf16 %v476_v16, %v475_v19  ;;  %v433_v35 = vadd.f32 %v1128_v60, %v432_v53  ;;  %v1087_v53 = vld [vmem:[#allocation10 + $0x18] sm:$0xff] }
 0x165   :  { %616 = vmatpush.bf16.msrb.mxu3 %v1087_v53 }
 0x166   :  { %v468_v41 = vmax.f32 %v433_v35, 0.0 }
 0x167   :  { %v455_v54 = vpop.f32.mrf.mxu2 }
 0x168   :  { %v456_v1 = vadd.f32 %v1128_v60, %v455_v54  ;;  %v482_v46 = vpack.c.bf16 %v468_v41, %v467_v44  ;;  %v1086_v54 = vld [vmem:[#allocation10 + $0x10] sm:$0xff] }
 0x169   :  { %617 = vmatpush.bf16.msrb.mxu3 %v1086_v54 }
 0x16a   :  { %v477_v15 = vmax.f32 %v456_v1, 0.0 }
 0x16b   :  { %v435_v55 = vpop.f32.mrf.mxu1 }
 0x16c   :  { %v436_v33 = vadd.f32 %v1128_v60, %v435_v55  ;;  %v1085_v55 = vld [vmem:[#allocation10 + $0x8] sm:$0xff] }
 0x16d   :  { %618 = vmatpush.bf16.msrb.mxu3 %v1085_v55 }
 0x16e   :  { %v469_v39 = vmax.f32 %v436_v33, 0.0 }
 0x16f   :  { %v457_v56 = vpop.f32.mrf.mxu2 }
 0x170   :  { %v458_v63 = vadd.f32 %v1128_v60, %v457_v56  ;;  %v1084_v56 = vld [vmem:[#allocation10] sm:$0xff] }
 0x171   :  { %619 = vmatpush.bf16.msrb.mxu3 %v1084_v56 }
 0x172   :  { %v478_v6 = vmax.f32 %v458_v63, 0.0 }
 0x173   :  { %v437_v57 = vpop.f32.mrf.mxu1 }
 0x174   :  { %v487_v17 = vpack.c.bf16 %v478_v6, %v477_v15  ;;  %v438_v30 = vadd.f32 %v1128_v60, %v437_v57 }
 0x176   :  { %v470_v36 = vmax.f32 %v438_v30, 0.0 }
 0x177   :  { %v460_v58 = vpop.f32.mrf.mxu2 }
 0x178   :  { %v461_v61 = vadd.f32 %v1128_v60, %v460_v58  ;;  %v483_v42 = vpack.c.bf16 %v470_v36, %v469_v39 }
 0x17a   :  { %v479_v2 = vmax.f32 %v461_v61, 0.0 }
 0x17b   :  { %v440_v59 = vpop.f32.mrf.mxu1 }
 0x17c   :  { %v441_v27 = vadd.f32 %v1128_v60, %v440_v59 }
 0x17e   :  { %v471_v34 = vmax.f32 %v441_v27, 0.0 }
 0x17f   :  { %v462_v62 = vpop.f32.mrf.mxu2 }
 0x180   :  { %v463_v0 = vadd.f32 %v1128_v60, %v462_v62 }
 0x182   :  { %v480_v3 = vmax.f32 %v463_v0, 0.0 }
 0x183   :  { %v442_v4 = vpop.f32.mrf.mxu1 }
 0x184   :  { %v488_v7 = vpack.c.bf16 %v480_v3, %v479_v2  ;;  %v443_v25 = vadd.f32 %v1128_v60, %v442_v4 }
 0x186   :  { %489 = vmatpush.bf16.msrb.mxu2 %v488_v7  ;;  %v472_v31 = vmax.f32 %v443_v25, 0.0 }
 0x188   :  { %v484_v37 = vpack.c.bf16 %v472_v31, %v471_v34 }
 0x18a   :  { %490 = vmatpush.bf16.msrb.mxu2 %v487_v17 }
 0x18b   :  { %v445_v21 = vpop.f32.mrf.mxu1 }
 0x18c   :  { %v446_v23 = vadd.f32 %v1128_v60, %v445_v21 }
 0x18e   :  { %491 = vmatpush.bf16.msrb.mxu2 %v486_v22  ;;  %v473_v28 = vmax.f32 %v446_v23, 0.0 }
 0x193   :  { %v447_v24 = vpop.f32.mrf.mxu1 }
 0x194   :  { %v448_v26 = vadd.f32 %v1128_v60, %v447_v24 }
 0x196   :  { %v474_v29 = vmax.f32 %v448_v26, 0.0  ;;  %v1129_v26 = vld [vmem:[#allocation11] ss:$0 sm:$0xff] }
 0x198   :  { %v485_v32 = vpack.c.bf16 %v474_v29, %v473_v28 }
 0x19a   :  { %492 = vmatpush.bf16.msrb.mxu2 %v485_v32 }
 0x19e   :  { %493 = vmatpush.bf16.msrb.mxu2 %v484_v37 }
 0x1a2   :  { %494 = vmatpush.bf16.msrb.mxu2 %v483_v42 }
 0x1a6   :  { %495 = vmatpush.bf16.msrb.mxu2 %v482_v46 }
 0x1aa   :  { %496 = vmatpush.bf16.msrb.mxu2 %v481_v50 }
 0x1ad   :  { %497 = vmatmul.bf16.vlgmr.msrb.gmra.mxu2 %v1487_v8 }
 0x1bd   :  { %502 = vmatmul.bf16.gmra.mxu2 %v1493_v10 }
 0x1cd   :  { %507 = vmatmul.bf16.gmra.mxu2 %v1499_v12 }
 0x1dd   :  { %512 = vmatmul.bf16.gmra.mxu2 %v1505_v18 }
 0x1ed   :  { %517 = vmatmul.bf16.gmra.mxu2 %v1508_v20 }
 0x1fd   :  { %522 = vmatmul.bf16.gmra.mxu2 %v1489_v9 }
 0x20d   :  { %527 = vmatmul.bf16.gmra.mxu2 %v1495_v11 }
 0x21d   :  { %532 = vmatmul.bf16.gmra.mxu2 %v1501_v13 }
 0x230   :  { %v498_v57 = vpop.f32.mrf.mxu2 }
 0x238   :  { %v500_v58 = vpop.f32.mrf.mxu2 }
 0x239   :  { %v538_v59 = vpack.c.bf16 %v500_v58, %v498_v57 }
 0x23b   :  { %620 = vmatmul.bf16.vlgmr.msrb.gmra.mxu3 %v538_v59 }
 0x240   :  { %v503_v60 = vpop.f32.mrf.mxu2 }
 0x248   :  { %v505_v61 = vpop.f32.mrf.mxu2 }
 0x249   :  { %v539_v62 = vpack.c.bf16 %v505_v61, %v503_v60 }
 0x24b   :  { %625 = vmatmul.bf16.gmra.mxu3 %v539_v62 }
 0x250   :  { %v508_v63 = vpop.f32.mrf.mxu2 }
 0x258   :  { %v510_v0 = vpop.f32.mrf.mxu2 }
 0x259   :  { %v540_v1 = vpack.c.bf16 %v510_v0, %v508_v63 }
 0x25b   :  { %630 = vmatmul.bf16.gmra.mxu3 %v540_v1 }
 0x260   :  { %v513_v2 = vpop.f32.mrf.mxu2 }
 0x268   :  { %v515_v3 = vpop.f32.mrf.mxu2 }
 0x269   :  { %v541_v4 = vpack.c.bf16 %v515_v3, %v513_v2 }
 0x26b   :  { %635 = vmatmul.bf16.gmra.mxu3 %v541_v4 }
 0x270   :  { %v518_v5 = vpop.f32.mrf.mxu2 }
 0x278   :  { %v520_v6 = vpop.f32.mrf.mxu2 }
 0x279   :  { %v542_v7 = vpack.c.bf16 %v520_v6, %v518_v5 }
 0x27b   :  { %640 = vmatmul.bf16.gmra.mxu3 %v542_v7 }
 0x280   :  { %v523_v14 = vpop.f32.mrf.mxu2 }
 0x288   :  { %v525_v15 = vpop.f32.mrf.mxu2 }
 0x289   :  { %v543_v16 = vpack.c.bf16 %v525_v15, %v523_v14 }
 0x28b   :  { %645 = vmatmul.bf16.gmra.mxu3 %v543_v16 }
 0x290   :  { %v528_v17 = vpop.f32.mrf.mxu2 }
 0x298   :  { %v530_v19 = vpop.f32.mrf.mxu2 }
 0x299   :  { %v544_v21 = vpack.c.bf16 %v530_v19, %v528_v17 }
 0x29b   :  { %650 = vmatmul.bf16.gmra.mxu3 %v544_v21 }
 0x2a0   :  { %v533_v22 = vpop.f32.mrf.mxu2 }
 0x2a8   :  { %v535_v23 = vpop.f32.mrf.mxu2 }
 0x2a9   :  { %v545_v24 = vpack.c.bf16 %v535_v23, %v533_v22 }
 0x2ab   :  { %655 = vmatmul.bf16.gmra.mxu3 %v545_v24 }
 0x2be   :  { %v621_v25 = vpop.f32.mrf.mxu3 }
 0x2bf   :  { %v622_v27 = vadd.f32 %v1129_v26, %v621_v25 }
 0x2c1   :  { %v661_v30 = vmax.f32 %v622_v27, 0.0  ;;  %v1098_v27 = vld [vmem:[#allocation13 + $0x30] sm:$0xff] }
 0x2c6   :  { %v623_v28 = vpop.f32.mrf.mxu3 }
 0x2c7   :  { %v624_v29 = vadd.f32 %v1129_v26, %v623_v28  ;;  %v1097_v28 = vld [vmem:[#allocation13 + $0x28] sm:$0xff] }
 0x2c9   :  { %v662_v31 = vmax.f32 %v624_v29, 0.0  ;;  %v1096_v29 = vld [vmem:[#allocation13 + $0x20] sm:$0xff] }
 0x2cb   :  { %v677_v32 = vpack.c.bf16 %v662_v31, %v661_v30  ;;  %v1095_v30 = vld [vmem:[#allocation13 + $0x18] sm:$0xff] }
 0x2ce   :  { %v626_v33 = vpop.f32.mrf.mxu3 }
 0x2cf   :  { %v627_v34 = vadd.f32 %v1129_v26, %v626_v33 }
 0x2d1   :  { %v663_v37 = vmax.f32 %v627_v34, 0.0 }
 0x2d6   :  { %v628_v35 = vpop.f32.mrf.mxu3 }
 0x2d7   :  { %v629_v36 = vadd.f32 %v1129_v26, %v628_v35 }
 0x2d9   :  { %v664_v38 = vmax.f32 %v629_v36, 0.0 }
 0x2db   :  { %v678_v39 = vpack.c.bf16 %v664_v38, %v663_v37 }
 0x2de   :  { %v631_v40 = vpop.f32.mrf.mxu3 }
 0x2df   :  { %v632_v41 = vadd.f32 %v1129_v26, %v631_v40 }
 0x2e1   :  { %v665_v44 = vmax.f32 %v632_v41, 0.0 }
 0x2e6   :  { %v633_v42 = vpop.f32.mrf.mxu3 }
 0x2e7   :  { %v634_v43 = vadd.f32 %v1129_v26, %v633_v42 }
 0x2e9   :  { %v666_v45 = vmax.f32 %v634_v43, 0.0 }
 0x2eb   :  { %v679_v46 = vpack.c.bf16 %v666_v45, %v665_v44 }
 0x2ee   :  { %v636_v47 = vpop.f32.mrf.mxu3 }
 0x2ef   :  { %v637_v50 = vadd.f32 %v1129_v26, %v636_v47 }
 0x2f1   :  { %v667_v51 = vmax.f32 %v637_v50, 0.0 }
 0x2f6   :  { %v638_v49 = vpop.f32.mrf.mxu3 }
 0x2f7   :  { %v639_v48 = vadd.f32 %v1129_v26, %v638_v49 }
 0x2f9   :  { %v668_v52 = vmax.f32 %v639_v48, 0.0 }
 0x2fb   :  { %v680_v53 = vpack.c.bf16 %v668_v52, %v667_v51 }
 0x2fe   :  { %v641_v54 = vpop.f32.mrf.mxu3 }
 0x2ff   :  { %v642_v19 = vadd.f32 %v1129_v26, %v641_v54 }
 0x301   :  { %v669_v24 = vmax.f32 %v642_v19, 0.0 }
 0x306   :  { %v643_v55 = vpop.f32.mrf.mxu3 }
 0x307   :  { %v644_v15 = vadd.f32 %v1129_v26, %v643_v55 }
 0x309   :  { %v670_v22 = vmax.f32 %v644_v15, 0.0 }
 0x30b   :  { %v681_v25 = vpack.c.bf16 %v670_v22, %v669_v24 }
 0x30e   :  { %v646_v56 = vpop.f32.mrf.mxu3 }
 0x30f   :  { %v647_v7 = vadd.f32 %v1129_v26, %v646_v56 }
 0x311   :  { %v671_v21 = vmax.f32 %v647_v7, 0.0 }
 0x316   :  { %v648_v57 = vpop.f32.mrf.mxu3 }
 0x317   :  { %v649_v4 = vadd.f32 %v1129_v26, %v648_v57 }
 0x319   :  { %v672_v16 = vmax.f32 %v649_v4, 0.0 }
 0x31b   :  { %v682_v23 = vpack.c.bf16 %v672_v16, %v671_v21 }
 0x31e   :  { %v651_v58 = vpop.f32.mrf.mxu3 }
 0x31f   :  { %v652_v1 = vadd.f32 %v1129_v26, %v651_v58 }
 0x321   :  { %v673_v14 = vmax.f32 %v652_v1, 0.0  ;;  %v1130_v1 = vld [vmem:[#allocation14] ss:$0 sm:$0xff] }
 0x326   :  { %v653_v59 = vpop.f32.mrf.mxu3 }
 0x327   :  { %v654_v63 = vadd.f32 %v1129_v26, %v653_v59 }
 0x329   :  { %v674_v5 = vmax.f32 %v654_v63, 0.0 }
 0x32b   :  { %v683_v17 = vpack.c.bf16 %v674_v5, %v673_v14 }
 0x32e   :  { %v656_v60 = vpop.f32.mrf.mxu3 }
 0x32f   :  { %v657_v61 = vadd.f32 %v1129_v26, %v656_v60 }
 0x331   :  { %v675_v2 = vmax.f32 %v657_v61, 0.0 }
 0x336   :  { %v658_v62 = vpop.f32.mrf.mxu3 }
 0x337   :  { %v659_v0 = vadd.f32 %v1129_v26, %v658_v62  ;;  %v1099_v26 = vld [vmem:[#allocation13 + $0x38] sm:$0xff] }
 0x338   :  { %808 = vmatpush.bf16.msrb.mxu1 %v1099_v26 }
 0x339   :  { %v676_v3 = vmax.f32 %v659_v0, 0.0 }
 0x33b   :  { %v684_v6 = vpack.c.bf16 %v676_v3, %v675_v2 }
 0x33c   :  { %809 = vmatpush.bf16.msrb.mxu1 %v1098_v27  ;;  %v857_v27 = vld [vmem:[#allocation16] sm:$0xff] }
 0x33d   :  { %685 = vmatpush.bf16.msrb.mxu0 %v684_v6 }
 0x340   :  { %810 = vmatpush.bf16.msrb.mxu1 %v1097_v28 }
 0x341   :  { %686 = vmatpush.bf16.msrb.mxu0 %v683_v17 }
 0x344   :  { %811 = vmatpush.bf16.msrb.mxu1 %v1096_v29 }
 0x345   :  { %687 = vmatpush.bf16.msrb.mxu0 %v682_v23 }
 0x348   :  { %812 = vmatpush.bf16.msrb.mxu1 %v1095_v30 }
 0x349   :  { %688 = vmatpush.bf16.msrb.mxu0 %v681_v25 }
 0x34d   :  { %689 = vmatpush.bf16.msrb.mxu0 %v680_v53 }
 0x351   :  { %690 = vmatpush.bf16.msrb.mxu0 %v679_v46 }
 0x355   :  { %691 = vmatpush.bf16.msrb.mxu0 %v678_v39 }
 0x359   :  { %692 = vmatpush.bf16.msrb.mxu0 %v677_v32 }
 0x35c   :  { %693 = vmatmul.bf16.vlgmr.msrb.gmra.mxu0 %v1487_v8  ;;  %v1094_v8 = vld [vmem:[#allocation13 + $0x10] sm:$0xff] }
 0x35d   :  { %813 = vmatpush.bf16.msrb.mxu1 %v1094_v8 }
 0x36c   :  { %698 = vmatmul.bf16.gmra.mxu0 %v1493_v10  ;;  %v1093_v10 = vld [vmem:[#allocation13 + $0x8] sm:$0xff] }
 0x36d   :  { %814 = vmatpush.bf16.msrb.mxu1 %v1093_v10 }
 0x37c   :  { %703 = vmatmul.bf16.gmra.mxu0 %v1499_v12  ;;  %v1092_v12 = vld [vmem:[#allocation13] sm:$0xff] }
 0x37d   :  { %815 = vmatpush.bf16.msrb.mxu1 %v1092_v12 }
 0x38c   :  { %708 = vmatmul.bf16.gmra.mxu0 %v1505_v18 }
 0x39c   :  { %713 = vmatmul.bf16.gmra.mxu0 %v1508_v20 }
 0x3ac   :  { %718 = vmatmul.bf16.gmra.mxu0 %v1489_v9 }
 0x3bc   :  { %723 = vmatmul.bf16.gmra.mxu0 %v1495_v11 }
 0x3cc   :  { %728 = vmatmul.bf16.gmra.mxu0 %v1501_v13 }
 0x3d9   :  { %v694_v18 = vpop.f32.mrf.mxu0 }
 0x3e1   :  { %v696_v20 = vpop.f32.mrf.mxu0 }
 0x3e2   :  { %v734_v31 = vpack.c.bf16 %v696_v20, %v694_v18 }
 0x3e4   :  { %816 = vmatmul.bf16.vlgmr.msrb.gmra.mxu1 %v734_v31 }
 0x3e9   :  { %v699_v9 = vpop.f32.mrf.mxu0 }
 0x3f1   :  { %v701_v32 = vpop.f32.mrf.mxu0 }
 0x3f2   :  { %v735_v33 = vpack.c.bf16 %v701_v32, %v699_v9 }
 0x3f4   :  { %821 = vmatmul.bf16.gmra.mxu1 %v735_v33 }
 0x3f9   :  { %v704_v34 = vpop.f32.mrf.mxu0 }
 0x401   :  { %v706_v35 = vpop.f32.mrf.mxu0 }
 0x402   :  { %v736_v36 = vpack.c.bf16 %v706_v35, %v704_v34 }
 0x404   :  { %826 = vmatmul.bf16.gmra.mxu1 %v736_v36 }
 0x409   :  { %v709_v37 = vpop.f32.mrf.mxu0 }
 0x411   :  { %v711_v38 = vpop.f32.mrf.mxu0 }
 0x412   :  { %v737_v11 = vpack.c.bf16 %v711_v38, %v709_v37 }
 0x414   :  { %831 = vmatmul.bf16.gmra.mxu1 %v737_v11 }
 0x419   :  { %v714_v39 = vpop.f32.mrf.mxu0 }
 0x421   :  { %v716_v40 = vpop.f32.mrf.mxu0 }
 0x422   :  { %v738_v41 = vpack.c.bf16 %v716_v40, %v714_v39 }
 0x424   :  { %836 = vmatmul.bf16.gmra.mxu1 %v738_v41 }
 0x429   :  { %v719_v13 = vpop.f32.mrf.mxu0 }
 0x431   :  { %v721_v42 = vpop.f32.mrf.mxu0 }
 0x432   :  { %v739_v43 = vpack.c.bf16 %v721_v42, %v719_v13 }
 0x434   :  { %841 = vmatmul.bf16.gmra.mxu1 %v739_v43 }
 0x439   :  { %v724_v44 = vpop.f32.mrf.mxu0 }
 0x441   :  { %v726_v45 = vpop.f32.mrf.mxu0 }
 0x442   :  { %v740_v46 = vpack.c.bf16 %v726_v45, %v724_v44 }
 0x444   :  { %846 = vmatmul.bf16.gmra.mxu1 %v740_v46 }
 0x449   :  { %v729_v47 = vpop.f32.mrf.mxu0 }
 0x451   :  { %v731_v50 = vpop.f32.mrf.mxu0 }
 0x452   :  { %v741_v49 = vpack.c.bf16 %v731_v50, %v729_v47 }
 0x454   :  { %851 = vmatmul.bf16.gmra.mxu1 %v741_v49 }
 0x461   :  { %v817_v48 = vpop.f32.mrf.mxu1 }
 0x462   :  { %v818_v26 = vadd.f32 %v1130_v1, %v817_v48 }
 0x469   :  { %v819_v51 = vpop.f32.mrf.mxu1 }
 0x46a   :  { %v820_v25 = vadd.f32 %v1130_v1, %v819_v51 }
 0x471   :  { %v822_v52 = vpop.f32.mrf.mxu1 }
 0x472   :  { %v823_v24 = vadd.f32 %v1130_v1, %v822_v52 }
 0x479   :  { %v824_v53 = vpop.f32.mrf.mxu1 }
 0x47a   :  { %v825_v23 = vadd.f32 %v1130_v1, %v824_v53 }
 0x481   :  { %v827_v54 = vpop.f32.mrf.mxu1 }
 0x482   :  { %v828_v22 = vadd.f32 %v1130_v1, %v827_v54 }
 0x489   :  { %v829_v55 = vpop.f32.mrf.mxu1 }
 0x48a   :  { %v830_v21 = vadd.f32 %v1130_v1, %v829_v55 }
 0x491   :  { %v832_v56 = vpop.f32.mrf.mxu1 }
 0x492   :  { %v833_v19 = vadd.f32 %v1130_v1, %v832_v56 }
 0x499   :  { %v834_v57 = vpop.f32.mrf.mxu1 }
 0x49a   :  { %v835_v17 = vadd.f32 %v1130_v1, %v834_v57 }
 0x4a1   :  { %v837_v58 = vpop.f32.mrf.mxu1 }
 0x4a2   :  { %v838_v16 = vadd.f32 %v1130_v1, %v837_v58 }
 0x4a9   :  { %v839_v59 = vpop.f32.mrf.mxu1 }
 0x4aa   :  { %v840_v15 = vadd.f32 %v1130_v1, %v839_v59 }
 0x4b1   :  { %v842_v60 = vpop.f32.mrf.mxu1 }
 0x4b2   :  { %v843_v14 = vadd.f32 %v1130_v1, %v842_v60 }
 0x4b9   :  { %v844_v61 = vpop.f32.mrf.mxu1 }
 0x4ba   :  { %v845_v7 = vadd.f32 %v1130_v1, %v844_v61 }
 0x4c1   :  { %v847_v62 = vpop.f32.mrf.mxu1 }
 0x4c2   :  { %v848_v6 = vadd.f32 %v1130_v1, %v847_v62 }
 0x4c9   :  { %v849_v63 = vpop.f32.mrf.mxu1 }
 0x4ca   :  { %v850_v5 = vadd.f32 %v1130_v1, %v849_v63 }
 0x4d1   :  { %v852_v0 = vpop.f32.mrf.mxu1 }
 0x4d2   :  { %v853_v4 = vadd.f32 %v1130_v1, %v852_v0 }
 0x4d9   :  { %v854_v2 = vpop.f32.mrf.mxu1 }
 0x4da   :  { %v855_v3 = vadd.f32 %v1130_v1, %v854_v2 }
 0x4dc   :  { %858 = vmatpush.msra.mxu2 %v855_v3 }
 0x4de   :  { %859 = vmatpush.msra.mxu2 %v853_v4 }
 0x4e0   :  { %860 = vmatpush.msra.mxu2 %v850_v5 }
 0x4e2   :  { %861 = vmatpush.msra.mxu2 %v848_v6 }
 0x4e4   :  { %862 = vmatpush.msra.mxu2 %v845_v7 }
 0x4e6   :  { %863 = vmatpush.msra.mxu2 %v843_v14 }
 0x4e8   :  { %864 = vmatpush.msra.mxu2 %v840_v15 }
 0x4ea   :  { %865 = vmatpush.msra.mxu2 %v838_v16 }
 0x4ec   :  { %866 = vmatpush.msra.mxu2 %v835_v17 }
 0x4ee   :  { %867 = vmatpush.msra.mxu2 %v833_v19 }
 0x4f0   :  { %868 = vmatpush.msra.mxu2 %v830_v21 }
 0x4f2   :  { %869 = vmatpush.msra.mxu2 %v828_v22 }
 0x4f4   :  { %870 = vmatpush.msra.mxu2 %v825_v23 }
 0x4f6   :  { %871 = vmatpush.msra.mxu2 %v823_v24 }
 0x4f8   :  { %872 = vmatpush.msra.mxu2 %v820_v25 }
 0x4fa   :  { %873 = vmatpush.msra.mxu2 %v818_v26 }
 0x4fb   :  { %874 = vmatmul.f32.vlgmr.msra.gmra.mxu2 %v857_v27 }
 0x57e   :  { %v875_v28 = vpop.f32.mrf.mxu2 }
 0x57f   :  { %878 = vst [vmem:[#allocation17] sm:$0xff] %v875_v28 }
 0x580   :  { %889 = dma.vmem_to_hbm [thread:$0]  %s885_s17, 128, %s887_s28, [#allocation4]  }
 0x581   :  { %1381 = dma.done.wait [#allocation4], 128  }
 0x582   :  { %1382 = vsyncadd [#allocation4], 4294967168 }
 0x583   :  { %894 = vsyncpa [#allocation3], 1 }
 0x584   :  { %895 = vsyncpa [#allocation6], 1 }
 0x585   :  { %896 = vsyncpa [#allocation9], 1 }
 0x586   :  { %897 = vsyncpa [#allocation12], 1 }
 0x587   :  { %898 = vsyncpa [#allocation15], 1 }
 0x588   :  { %899 = vsyncpa [#allocation4], 1 }

</bundles_post_ra>
